<compile_context>
chip_gen: v6e
topology: v6e:2x2x1
jax: 0.10.0
libtpu: 0.0.40
codegen_flags: <defaults>
</compile_context>

<pallas_src>
import functools

import jax
import jax.numpy as jnp
from jax.experimental import pallas as pl
from jax.experimental.pallas import tpu as pltpu


_MAX_BLOCK_B = 1024  # batch rows per grid step (multiple of 8)


def decide_hs(d: int) -> int:
    if d < 4:
        return 4
    if d < 16:
        return d
    if d < 64:
        return int(1.5 * d)
    return min(int(1.5 * d), 256)


def _round_up(n: int, m: int) -> int:
    return ((n + m - 1) // m) * m


def _hash_keep_scale(idx, seed_scalar):
    """Deterministic Bernoulli(0.5) dropout scale (0.0 or 2.0) per element.

    xorshift32-style mixer built only from add/xor/shift so it lowers both in
    Mosaic and in the CPU interpreter (unlike pltpu.prng_random_bits).
    """
    z = idx ^ seed_scalar
    z = z ^ (z << 13)
    z = z ^ jax.lax.shift_right_logical(z, 17)
    z = z ^ (z << 5)
    z = z + jnp.int32(-1640531527)          # += 0x9E3779B9 (mod 2^32)
    z = z ^ (z << 13)
    z = z ^ jax.lax.shift_right_logical(z, 17)
    z = z ^ (z << 5)
    bit = jax.lax.shift_right_logical(z, 15) & 1          # middle bit
    # keep w.p. 0.5, survivors scaled by 1/(1-p) = 2 (inverted dropout).
    return bit.astype(jnp.float32) * 2.0


def _mlp_dropout_kernel(seed_ref, x_ref, w1_ref, b1_ref, w2_ref, b2_ref, out_ref):
    # seed_ref: SMEM int32[1]; x_ref: (TB, D); w1_ref: (D, H_pad);
    # b1_ref: (1, H_pad); w2_ref: (1, H_pad); b2_ref: (1, 1); out_ref: (1, TB).
    x = x_ref[...].astype(jnp.float32)                               # (TB, D)

    # ---- Linear(d, hidden) + ReLU (MXU) ----
    h = jnp.dot(x, w1_ref[...], preferred_element_type=jnp.float32)  # (TB, Hp)
    h = jnp.maximum(h + b1_ref[...], 0.0)

    # ---- Dropout(p=0.5), training mode ----
    tb, hp = h.shape
    row = jax.lax.broadcasted_iota(jnp.int32, (tb, hp), 0) + pl.program_id(0) * tb
    col = jax.lax.broadcasted_iota(jnp.int32, (tb, hp), 1)
    idx = row * hp + col                                  # global element index
    keep_scale = _hash_keep_scale(idx, seed_ref[0])       # 0.0 or 2.0
    h = h * keep_scale                                    # single vmul, no select
    # TODO(synk): eval-mode (no dropout) toggle not modeled; module forward is
    # always training-mode dropout, which is what is implemented here.

    # ---- Linear(hidden, 1) + Sigmoid, emitted lane-dense as (1, TB) ----
    logits = jax.lax.dot_general(
        w2_ref[...], h,
        dimension_numbers=(((1,), (1,)), ((), ())),
        preferred_element_type=jnp.float32,
    )                                                     # (1, TB)
    logits = logits + b2_ref[...]                         # (1,1) broadcast
    out_ref[...] = 1.0 / (1.0 + jnp.exp(-logits))         # exp on EUP


@jax.jit
def _forward(x, w1_t, b1, w2_t, b2, seed):
    """x: (B, d); w1_t: (d, H); b1: (1, H); w2_t: (H, 1); b2: (1, 1); seed: int32[1]."""
    B, D = x.shape
    H = w1_t.shape[1]
    H_pad = _round_up(max(H, 1), 128)                     # lane-align hidden dim

    # Batch tiling: TB is a multiple of 8; batch padded up to a whole grid.
    TB = min(_MAX_BLOCK_B, _round_up(B, 8))
    B_pad = _round_up(B, TB)
    G = B_pad // TB

    xf = x.astype(jnp.float32)                            # input.to(torch.float32)
    xp = jnp.pad(xf, ((0, B_pad - B), (0, 0)))

    # Zero-pad parameters along the hidden dim: padded hidden units are 0 after
    # ReLU and their w2 entries are 0, so they contribute nothing.
    w1p = jnp.pad(w1_t.astype(jnp.float32), ((0, 0), (0, H_pad - H)))
    b1p = jnp.pad(b1.reshape(1, H).astype(jnp.float32), ((0, 0), (0, H_pad - H)))
    w2p = jnp.pad(w2_t.reshape(1, H).astype(jnp.float32), ((0, 0), (0, H_pad - H)))
    b2p = b2.reshape(1, 1).astype(jnp.float32)

    out = pl.pallas_call(
        _mlp_dropout_kernel,
        out_shape=jax.ShapeDtypeStruct((1, B_pad), jnp.float32),
        grid=(G,),
        in_specs=[
            pl.BlockSpec(memory_space=pltpu.MemorySpace.SMEM),   # seed scalar
            pl.BlockSpec((TB, D), lambda i: (i, 0)),             # streamed x tile
            pl.BlockSpec((D, H_pad), lambda i: (0, 0)),          # resident W1
            pl.BlockSpec((1, H_pad), lambda i: (0, 0)),          # resident b1
            pl.BlockSpec((1, H_pad), lambda i: (0, 0)),          # resident W2 row
            pl.BlockSpec((1, 1), lambda i: (0, 0)),              # resident b2
        ],
        out_specs=pl.BlockSpec((1, TB), lambda i: (0, i)),       # lane-dense out
        compiler_params=pltpu.CompilerParams(
            dimension_semantics=("parallel",),
        ),
    )(seed, xp, w1p, b1p, w2p, b2p)

    return out[0, :B].reshape(B, 1)


def neural_network_cln_dropout_forward(x, w1_t, b1, w2_t, b2, seed):
    # Mirrors the PyTorch module: returns (prediction, 0).
    return _forward(x, w1_t, b1, w2_t, b2, seed), 0


if __name__ == "__main__":
    # Small, module-consistent shapes: batch=8, d=32 -> hidden = decide_hs(32) = 48.
    B, D = 8, 32
    H = decide_hs(D)

    key = jax.random.PRNGKey(0)
    kx, kw1, kb1, kw2, kb2 = jax.random.split(key, 5)

    x = jax.random.normal(kx, (B, D), dtype=jnp.float32)

    # Deterministic parameter init (uniform, roughly matching nn.Linear's scale).
    lim1 = 1.0 / (D ** 0.5)
    lim2 = 1.0 / (H ** 0.5)
    w1_t = jax.random.uniform(kw1, (D, H), jnp.float32, -lim1, lim1)  # transposed W1
    b1 = jax.random.uniform(kb1, (1, H), jnp.float32, -lim1, lim1)
    w2_t = jax.random.uniform(kw2, (H, 1), jnp.float32, -lim2, lim2)  # transposed W2
    b2 = jax.random.uniform(kb2, (1, 1), jnp.float32, -lim2, lim2)

    seed = jnp.array([1234], dtype=jnp.int32)

    y_pred, zero = neural_network_cln_dropout_forward(x, w1_t, b1, w2_t, b2, seed)
    y_pred = jax.block_until_ready(y_pred)

    assert y_pred.shape == (B, 1)
    assert y_pred.dtype == jnp.float32
    assert bool(jnp.all((y_pred >= 0.0) & (y_pred <= 1.0)))
    assert zero == 0
    print("KERNEL_OK")
</pallas_src>

<mosaic_0001>
module attributes {stable_mosaic.version = 11 : i64} {
  func.func @_mlp_dropout_kernel(%arg0: i32, %arg1: memref<1xi32, #tpu.memory_space<smem>>, %arg2: memref<8x32xf32, #tpu.memory_space<vmem>>, %arg3: memref<32x128xf32, #tpu.memory_space<vmem>>, %arg4: memref<1x128xf32, #tpu.memory_space<vmem>>, %arg5: memref<1x128xf32, #tpu.memory_space<vmem>>, %arg6: memref<1x1xf32, #tpu.memory_space<vmem>>, %arg7: memref<1x8xf32, #tpu.memory_space<vmem>>) attributes {dimension_semantics = [#tpu.dimension_semantics<parallel>], iteration_bounds = array<i64: 1>, scalar_prefetch = 0 : i64, scratch_operands = 0 : i64, tpu.core_type = #tpu.core_type<tc>, window_params = [{transform_indices = @transform_0, window_bounds = array<i64: 1>}, {transform_indices = @transform_1, window_bounds = array<i64: 8, 32>}, {pipeline_mode = #tpu.pipeline_mode<synchronous>, transform_indices = @transform_2, window_bounds = array<i64: 32, 128>}, {pipeline_mode = #tpu.pipeline_mode<synchronous>, transform_indices = @transform_3, window_bounds = array<i64: 1, 128>}, {pipeline_mode = #tpu.pipeline_mode<synchronous>, transform_indices = @transform_4, window_bounds = array<i64: 1, 128>}, {pipeline_mode = #tpu.pipeline_mode<synchronous>, transform_indices = @transform_5, window_bounds = array<i64: 1, 1>}, {transform_indices = @transform_6, window_bounds = array<i64: 1, 8>}]} {
    %c0 = arith.constant 0 : index
    %c0_0 = arith.constant 0 : index
    %0 = vector.load %arg2[%c0, %c0_0] : memref<8x32xf32, #tpu.memory_space<vmem>>, vector<8x32xf32>
    %c0_1 = arith.constant 0 : index
    %c0_2 = arith.constant 0 : index
    %1 = vector.load %arg3[%c0_1, %c0_2] : memref<32x128xf32, #tpu.memory_space<vmem>>, vector<32x128xf32>
    %cst = arith.constant dense<0.000000e+00> : vector<8x128xf32>
    %2 = tpu.matmul %0, %1, %cst {dimension_numbers = #tpu.dot_dimension_numbers<[1], [0], [0], [1], [0, 0, 1, 1], [], []>} : vector<8x32xf32>, vector<32x128xf32>, vector<8x128xf32> -> vector<8x128xf32>
    %c0_3 = arith.constant 0 : index
    %c0_4 = arith.constant 0 : index
    %3 = vector.load %arg4[%c0_3, %c0_4] : memref<1x128xf32, #tpu.memory_space<vmem>>, vector<1x128xf32>
    %4 = vector.broadcast %3 : vector<1x128xf32> to vector<8x128xf32>
    %5 = arith.addf %2, %4 : vector<8x128xf32>
    %cst_5 = arith.constant 0.000000e+00 : f32
    %6 = vector.broadcast %cst_5 : f32 to vector<8x128xf32>
    %7 = arith.maximumf %5, %6 : vector<8x128xf32>
    %8 = tpu.iota {dimensions = array<i32: 0>} : vector<8x128xi32>
    %c8_i32 = arith.constant 8 : i32
    %9 = arith.muli %arg0, %c8_i32 : i32
    %10 = vector.broadcast %9 : i32 to vector<8x128xi32>
    %11 = arith.addi %8, %10 : vector<8x128xi32>
    %12 = tpu.iota {dimensions = array<i32: 1>} : vector<8x128xi32>
    %c128_i32 = arith.constant 128 : i32
    %13 = vector.broadcast %c128_i32 : i32 to vector<8x128xi32>
    %14 = arith.muli %11, %13 : vector<8x128xi32>
    %15 = arith.addi %14, %12 : vector<8x128xi32>
    %c0_6 = arith.constant 0 : index
    %16 = memref.load %arg1[%c0_6] : memref<1xi32, #tpu.memory_space<smem>>
    %17 = vector.broadcast %16 : i32 to vector<8x128xi32>
    %18 = arith.xori %15, %17 : vector<8x128xi32>
    %c13_i32 = arith.constant 13 : i32
    %19 = vector.broadcast %c13_i32 : i32 to vector<8x128xi32>
    %20 = arith.shli %18, %19 : vector<8x128xi32>
    %21 = arith.xori %18, %20 : vector<8x128xi32>
    %c17_i32 = arith.constant 17 : i32
    %22 = vector.broadcast %c17_i32 : i32 to vector<8x128xi32>
    %23 = arith.shrui %21, %22 : vector<8x128xi32>
    %24 = arith.xori %21, %23 : vector<8x128xi32>
    %c5_i32 = arith.constant 5 : i32
    %25 = vector.broadcast %c5_i32 : i32 to vector<8x128xi32>
    %26 = arith.shli %24, %25 : vector<8x128xi32>
    %27 = arith.xori %24, %26 : vector<8x128xi32>
    %c-1640531527_i32 = arith.constant -1640531527 : i32
    %28 = vector.broadcast %c-1640531527_i32 : i32 to vector<8x128xi32>
    %29 = arith.addi %27, %28 : vector<8x128xi32>
    %c13_i32_7 = arith.constant 13 : i32
    %30 = vector.broadcast %c13_i32_7 : i32 to vector<8x128xi32>
    %31 = arith.shli %29, %30 : vector<8x128xi32>
    %32 = arith.xori %29, %31 : vector<8x128xi32>
    %c17_i32_8 = arith.constant 17 : i32
    %33 = vector.broadcast %c17_i32_8 : i32 to vector<8x128xi32>
    %34 = arith.shrui %32, %33 : vector<8x128xi32>
    %35 = arith.xori %32, %34 : vector<8x128xi32>
    %c5_i32_9 = arith.constant 5 : i32
    %36 = vector.broadcast %c5_i32_9 : i32 to vector<8x128xi32>
    %37 = arith.shli %35, %36 : vector<8x128xi32>
    %38 = arith.xori %35, %37 : vector<8x128xi32>
    %c15_i32 = arith.constant 15 : i32
    %39 = vector.broadcast %c15_i32 : i32 to vector<8x128xi32>
    %40 = arith.shrui %38, %39 : vector<8x128xi32>
    %c1_i32 = arith.constant 1 : i32
    %41 = vector.broadcast %c1_i32 : i32 to vector<8x128xi32>
    %42 = arith.andi %40, %41 : vector<8x128xi32>
    %43 = arith.sitofp %42 : vector<8x128xi32> to vector<8x128xf32>
    %cst_10 = arith.constant 2.000000e+00 : f32
    %44 = vector.broadcast %cst_10 : f32 to vector<8x128xf32>
    %45 = arith.mulf %43, %44 : vector<8x128xf32>
    %46 = arith.mulf %7, %45 : vector<8x128xf32>
    %c0_11 = arith.constant 0 : index
    %c0_12 = arith.constant 0 : index
    %47 = vector.load %arg5[%c0_11, %c0_12] : memref<1x128xf32, #tpu.memory_space<vmem>>, vector<1x128xf32>
    %cst_13 = arith.constant dense<0.000000e+00> : vector<1x8xf32>
    %48 = tpu.matmul %47, %46, %cst_13 {dimension_numbers = #tpu.dot_dimension_numbers<[1], [1], [0], [0], [0, 0, 1, 0], [], []>} : vector<1x128xf32>, vector<8x128xf32>, vector<1x8xf32> -> vector<1x8xf32>
    %c0_14 = arith.constant 0 : index
    %c0_15 = arith.constant 0 : index
    %49 = vector.load %arg6[%c0_14, %c0_15] : memref<1x1xf32, #tpu.memory_space<vmem>>, vector<1x1xf32>
    %50 = vector.broadcast %49 : vector<1x1xf32> to vector<1x8xf32>
    %51 = arith.addf %48, %50 : vector<1x8xf32>
    %cst_16 = arith.constant 0.000000e+00 : f32
    %52 = vector.broadcast %cst_16 : f32 to vector<1x8xf32>
    %53 = arith.subf %52, %51 : vector<1x8xf32>
    %54 = math.exp %53 : vector<1x8xf32>
    %cst_17 = arith.constant 1.000000e+00 : f32
    %55 = vector.broadcast %cst_17 : f32 to vector<1x8xf32>
    %56 = arith.addf %55, %54 : vector<1x8xf32>
    %cst_18 = arith.constant 1.000000e+00 : f32
    %57 = vector.broadcast %cst_18 : f32 to vector<1x8xf32>
    %58 = arith.divf %57, %56 : vector<1x8xf32>
    %c0_19 = arith.constant 0 : index
    %c0_20 = arith.constant 0 : index
    %59 = vector.load %arg7[%c0_19, %c0_20] : memref<1x8xf32, #tpu.memory_space<vmem>>, vector<1x8xf32>
    tpu.vector_store %arg7[%c0_19, %c0_20], %58 {strides = array<i32>} : memref<1x8xf32, #tpu.memory_space<vmem>>, vector<1x8xf32>,
    return
  }
  func.func @transform_0(%arg0: i32) -> i32 {
    %c0_i32 = arith.constant 0 : i32
    %c0_i32_0 = arith.constant 0 : i32
    return %c0_i32 : i32
  }
  func.func @transform_1(%arg0: i32) -> (i32, i32) {
    %c0_i32 = arith.constant 0 : i32
    %c0_i32_0 = arith.constant 0 : i32
    return %arg0, %c0_i32 : i32, i32
  }
  func.func @transform_2(%arg0: i32) -> (i32, i32) {
    %c0_i32 = arith.constant 0 : i32
    %c0_i32_0 = arith.constant 0 : i32
    %c0_i32_1 = arith.constant 0 : i32
    return %c0_i32, %c0_i32_0 : i32, i32
  }
  func.func @transform_3(%arg0: i32) -> (i32, i32) {
    %c0_i32 = arith.constant 0 : i32
    %c0_i32_0 = arith.constant 0 : i32
    %c0_i32_1 = arith.constant 0 : i32
    return %c0_i32, %c0_i32_0 : i32, i32
  }
  func.func @transform_4(%arg0: i32) -> (i32, i32) {
    %c0_i32 = arith.constant 0 : i32
    %c0_i32_0 = arith.constant 0 : i32
    %c0_i32_1 = arith.constant 0 : i32
    return %c0_i32, %c0_i32_0 : i32, i32
  }
  func.func @transform_5(%arg0: i32) -> (i32, i32) {
    %c0_i32 = arith.constant 0 : i32
    %c0_i32_0 = arith.constant 0 : i32
    %c0_i32_1 = arith.constant 0 : i32
    return %c0_i32, %c0_i32_0 : i32, i32
  }
  func.func @transform_6(%arg0: i32) -> (i32, i32) {
    %c0_i32 = arith.constant 0 : i32
    %c0_i32_0 = arith.constant 0 : i32
    return %c0_i32, %arg0 : i32, i32
  }
}

</mosaic_0001>

<bundles_post_ra>
// kernel: _forward.1
= control target key start
LH: loop header
LB: loop body
LE: loop exit
PB: predicated region body
PF: predicated region fallthrough
CT: control target
= control target key end

     0   :  { %s372_s0 = inlined_call_operand.<no memory space> [shape: s32[1], index: 0, kind: input, shape index: {}]   ;;  %s373_s1 = inlined_call_operand.vmem [shape: f32[8,32], index: 1, kind: input, shape index: {}]   ;;  %s374_s2 = inlined_call_operand.vmem [shape: f32[32,128], index: 2, kind: input, shape index: {}]   ;;  %s375_s3 = inlined_call_operand.vmem [shape: f32[1,128], index: 3, kind: input, shape index: {}]   ;;  %s376_s4 = inlined_call_operand.vmem [shape: f32[1,128], index: 4, kind: input, shape index: {}]   ;;  %s377_s5 = inlined_call_operand.<no memory space> [shape: f32[1,1], index: 5, kind: input, shape index: {}]   ;;  %s378_s6 = inlined_call_operand.hbm [shape: f32[1,8], index: 6, kind: output, shape index: {}]  }
   0x1   :  { %v12_v0 = vstv %s377_s5 }
   0x2   :  { %13 = vst [vmem:[#allocation3] sm:$0x1] %v12_v0 }
   0x3   :  { %v31_v1 = vld [vmem:[%s374_s2 + $0x18] sm:$0xff]  ;;  %v303_v2 = vmov 0.0   ;;  %v30_v3 = vld [vmem:[%s374_s2 + $0x10] sm:$0xff]  ;;  %vm304_vm0 = vmmov 0  }
   0x4   :  { %256 = vmatprep.subr.mxu0 %v303_v2  ;;  %264 = vmatprep.mubr.msk.f32.mxu0 %vm304_vm0, %v303_v2 }
   0x5   :  { %257 = vmatpush3.msra.mxu0 %v31_v1  ;;  %267 = vmatprep.subr.mxu1 %v303_v2 }
   0x6   :  { %14 = vsyncpa [#allocation5], 0  ;;  %258 = vmatprep.subr.mxu0 %v303_v2  ;;  %v29_v4 = vld [vmem:[%s374_s2 + $0x8] sm:$0xff]  ;;  %269 = vmatprep.mubr.msk.f32.mxu1 %vm304_vm0, %v303_v2  ;;  %v28_v5 = vld [vmem:[%s374_s2] sm:$0xff]  ;;  %vm39_vm1 = vcmask 261120   ;;  %v305_v8 = vmov 0   ;;  %v114_v9 = vlaneseq  ;;  %v124_v14 = vstv %s372_s0 }
   0x7   :  { %259 = vmatpush3.msra.mxu0 %v30_v3  ;;  %v27_v6 = vld [vmem:[%s373_s1] sm:$0xff]  ;;  %276 = vset.pattern.permute.xlu0 %v305_v8  ;;  %vm231_vm2 = vcmask 57344  }
   0x8   :  { %260 = vmatprep.subr.mxu0 %v303_v2  ;;  %v115_v10 = vshrl.u32 %v114_v9, 7  ;;  %v120_v11 = vand.u32 127, %v114_v9  ;;  %v247_v32 = vld [vmem:[%s375_s3] ss:$0 sm:$0xff]  ;;  %s306_s3 = smov [#allocation4]  }
   0x9   :  { %261 = vmatpush3.msra.mxu0 %v29_v4  ;;  %v145_v7 = vld [vmem:[#allocation3] sm:$0x1]  ;;  %s239_s11 = sshll.u32 %s306_s3, 4  ;;  %s240_s11 = int_to_ptr.vmem [resolvable:$true] %s239_s11 }
   0xa   :  { %262 = vmatprep.subr.mxu0 %v303_v2  ;;  %148 = vperm.xlu0 %276, %v145_v7   ;;  %v121_v12 = vmul.u32 128, %v115_v10  ;;  %v144_v39 = vld [vmem:[%s376_s4] sm:$0x1]  ;;  %v153_v40 = vsub.s32 0, %v115_v10  ;;  %s281_s4 = scalar_lea.vmem %s240_s11, 16  ;;  %s285_s12 = scalar_lea.vmem %s240_s11, 32 }
   0xb   :  { %263 = vmatpush3.msra.mxu0 %v28_v5  ;;  %p282_p0 = scmp.ne.s32.totalorder %s240_s11, %s281_s4  ;;  %p286_p1 = scmp.lt.s32.totalorder %s240_s11, %s240_s11 }
   0xc   :  { %265 = vmatmul.mubr.msk.f32.vlgmr.msra.gmra.mxu0 %vm39_vm1, %v27_v6  ;;  %v122_v13 = vadd.s32 %v121_v12, %v120_v11  ;;  %p287_p2 = scmp.lt.s32.totalorder %s285_s12, %s281_s4 }
   0xe   :  { %v125_v15 = vxor.u32 %v124_v14, %v122_v13  ;;  %p288_p3 = por %p287_p2, %p286_p1 }
  0x10   :  { %v126_v16 = vshll.u32 %v125_v15, 13  ;;  %p289_p4 = pnand %p288_p3, %p282_p0 }
  0x12   :  { %v127_v17 = vxor.u32 %v126_v16, %v125_v15 }
  0x14   :  { %v128_v18 = vshrl.u32 %v127_v17, 17 }
  0x16   :  { %v129_v19 = vxor.u32 %v128_v18, %v127_v17 }
  0x18   :  { %v130_v20 = vshll.u32 %v129_v19, 5 }
  0x1a   :  { %v131_v21 = vxor.u32 %v130_v20, %v129_v19 }
  0x1c   :  { %v132_v22 = vadd.s32 2654435769, %v131_v21 }
  0x1e   :  { %v133_v23 = vshll.u32 %v132_v22, 13 }
  0x20   :  { %v134_v24 = vxor.u32 %v133_v23, %v132_v22 }
  0x22   :  { %v135_v25 = vshrl.u32 %v134_v24, 17 }
  0x24   :  { %v136_v26 = vxor.u32 %v135_v25, %v134_v24 }
  0x26   :  { %v137_v27 = vshll.u32 %v136_v26, 5 }
  0x28   :  { %v138_v28 = vxor.u32 %v137_v27, %v136_v26 }
  0x2a   :  { %v139_v29 = vshrl.u32 %v138_v28, 15 }
  0x2c   :  { %v140_v30 = vand.u32 1, %v139_v29 }
  0x2e   :  { %v141_v31 = vcvt.s32.f32 %v140_v30 }
  0x30   :  { %v142_v35 = vmul.f32 2.0, %v141_v31 }
  0x85   :  { %v149_v41 = vpop.permute.xlu0 %148 }
  0x86   :  { %v154_v42 = vrot.slane %v149_v41, %v153_v40 }
  0xcc   :  { %v109_v33 = vpop.f32.mrf.mxu0 }
  0xcd   :  { %v110_v34 = vadd.f32 %v247_v32, %v109_v33 }
  0xce   :  { %v266_v36 = vpop.f32.mrf.mxu0 }
  0xcf   :  { %v113_v37 = vmax.f32 %v110_v34, 0.0 }
  0xd1   :  { %v143_v38 = vmul.f32 %v142_v35, %v113_v37 }
  0xd3   :  { %268 = vmatpush3.xpose.msra.mxu1 %v143_v38 }
  0xd6   :  { %270 = vmatmul.mubr.f32.vlgmr.msra.gmra.mxu1 %v144_v39 }
 0x196   :  { %v221_v43 = vpop.f32.mrf.mxu1 }
 0x197   :  { %v222_v44 = vadd.f32 %v221_v43, %v154_v42 }
 0x198   :  { %v271_v45 = vpop.f32.mrf.mxu1 }
 0x199   :  { %v225_v46 = vsub.f32 0.0, %v222_v44 }
 0x19b   :  { %v226_v47 = vmul.f32 1.442695, %v225_v46 }
 0x19d   :  { %277 = vpow2.f32 %v226_v47 }
 0x1aa   :  { %v278_v48 = vpop.eup %277 }
 0x1ab   :  { %v228_v49 = vadd.f32 1.0, %v278_v48 }
 0x1ad   :  { %279 = vrcp.f32 %v228_v49 }
 0x1ba   :  { %v280_v50 = vpop.eup %279 }
 0x1bb   :  { %232 = vst.msk [vmem:[#allocation4] sm:$0x1] %vm231_vm2, %v280_v50 }
 0x1bc   :  { %292 = shalt.err (!%p289_p4)
}
 0x1bd   :  { %242 = dma.vmem_to_hbm [thread:$0]  %s240_s11, 16, %s378_s6, [#allocation5]  }
 0x1be   :  { %301 = dma.done.wait [#allocation5], 16  }
 0x1bf   :  { %302 = vsyncadd [#allocation5], 4294967280 }
 0x1c0   :  { %246 = vsyncpa [#allocation5], 1 }

</bundles_post_ra>
